<compile_context>
chip_gen: v7x
topology: tpu7x:2x2x1
jax: 0.10.0
libtpu: 0.0.40
codegen_flags: <defaults>
</compile_context>

<pallas_src>
import functools

import jax
import jax.numpy as jnp
from jax.experimental import pallas as pl
from jax.experimental.pallas import tpu as pltpu


def _round_up(x, m):
    return ((x + m - 1) // m) * m


# ---------------------------------------------------------------------------
# Fused forward kernel
# ---------------------------------------------------------------------------
def _minecart_kernel(s_ref, r_ref, h_ref,
                     w_state_ref, w_ret_ref, w_hor_ref, b_sc_ref,
                     w1_ref, b1_ref, w2_ref, b2_ref,
                     o_ref):
    H = w1_ref.shape[0]                       # hidden size (64)

    s_in = s_ref[...].astype(jnp.float32)     # (tm, 6)
    r_in = r_ref[...].astype(jnp.float32)     # (tm, 3)
    hor = h_ref[...].astype(jnp.float32)      # (tm, 1)

    # Fused s_emb | c_emb pre-activation: one lane-dense (tm, 2H=128) tensor,
    # lanes [0,H) = s_emb, lanes [H,2H) = c_emb (scaling factor folded into the
    # c-half weights at init).
    sc = (jnp.dot(s_in, w_state_ref[...], preferred_element_type=jnp.float32)
          + jnp.dot(r_in, w_ret_ref[...], preferred_element_type=jnp.float32)
          + hor * w_hor_ref[...]              # K=1 contribution as a broadcast mul
          + b_sc_ref[...])
    sc = 1.0 / (1.0 + jnp.exp(-sc))           # one exact sigmoid over 128 lanes

    h = sc[:, :H] * sc[:, H:]                 # s * c  -> (tm, 64)

    # fc head: Linear(64,64) -> ReLU -> Linear(64,nA_pad) -> LogSoftmax
    h = jnp.dot(h, w1_ref[...], preferred_element_type=jnp.float32) + b1_ref[...]
    h = jnp.maximum(h, 0.0)
    logits = jnp.dot(h, w2_ref[...], preferred_element_type=jnp.float32) + b2_ref[...]

    m = jnp.max(logits, axis=-1, keepdims=True)
    z = logits - m
    lse = jnp.log(jnp.sum(jnp.exp(z), axis=-1, keepdims=True))
    o_ref[...] = z - lse


def minecart_forward(kparams, state, desired_return, desired_horizon,
                     *, n_actions, block_batch=1024):
    """Fused MinecartModel forward. Returns log-probabilities (B, n_actions)."""
    B, nS = state.shape
    nR = desired_return.shape[1]
    nHo = desired_horizon.shape[1]
    H = kparams["w1"].shape[0]
    nA_pad = kparams["w2"].shape[1]

    block_batch = max(8, _round_up(block_batch, 8))
    if B > block_batch:
        tm = block_batch
    else:
        # >=2 grid steps when there is enough work, so the "parallel" axis can
        # be sharded across the 2 TensorCores on v7x; tm stays a multiple of 8.
        tm = min(block_batch, max(8, _round_up(pl.cdiv(B, 2), 8)))
    grid = (pl.cdiv(B, tm),)

    # Rough VMEM footprint (double-buffered I/O tiles + weights + f32
    # intermediates).  Only raise the scoped limit if we get close to the v5e
    # 16 MiB default.
    n_in = nS + nR + nHo
    w_elems = (nS + nR + nHo + 1) * 2 * H + H * H + H + H * nA_pad + nA_pad
    vmem_est = 4 * (2 * tm * (n_in + nA_pad) + 2 * w_elems
                    + tm * (2 * H + 2 * H + nA_pad))
    vmem_limit = None
    if vmem_est > (14 << 20):
        vmem_limit = int(min(2 * vmem_est, 64 << 20))

    rows = lambda shape: pl.BlockSpec(shape, lambda i: (i, 0))
    full = lambda shape: pl.BlockSpec(shape, lambda i: (0, 0))

    out = pl.pallas_call(
        _minecart_kernel,
        out_shape=jax.ShapeDtypeStruct((B, nA_pad), jnp.float32),
        grid=grid,
        in_specs=[
            rows((tm, nS)),            # state tile
            rows((tm, nR)),            # desired_return tile
            rows((tm, nHo)),           # desired_horizon tile
            full((nS, 2 * H)),         # fused s-emb rows  -> lanes [0,128)
            full((nR, 2 * H)),         # fused c-emb rows (return part, scaled)
            full((nHo, 2 * H)),        # fused c-emb row  (horizon part, scaled)
            full((1, 2 * H)),          # fused bias [b_s | b_c]
            full((H, H)), full((1, H)),        # fc1
            full((H, nA_pad)), full((1, nA_pad)),  # fc2 (lane-padded)
        ],
        out_specs=rows((tm, nA_pad)),
        compiler_params=pltpu.CompilerParams(
            dimension_semantics=("parallel",),
            vmem_limit_bytes=vmem_limit),
    )(state, desired_return, desired_horizon,
      kparams["w_state"], kparams["w_ret"], kparams["w_hor"], kparams["b_sc"],
      kparams["w1"], kparams["b1"], kparams["w2"], kparams["b2"])

    if nA_pad != n_actions:
        out = out[:, :n_actions]
    return out


# ---------------------------------------------------------------------------
# Pure-JAX reference (for correctness check)
# ---------------------------------------------------------------------------
def minecart_forward_ref(params, state, desired_return, desired_horizon):
    c = jnp.concatenate([desired_return, desired_horizon], axis=-1)
    c = c * params["scale"]
    s = jax.nn.sigmoid(state.astype(jnp.float32) @ params["w_s"] + params["b_s"])
    c = jax.nn.sigmoid(c @ params["w_c"] + params["b_c"])
    h = jax.nn.relu((s * c) @ params["w1"] + params["b1"])
    logits = h @ params["w2"] + params["b2"]
    return jax.nn.log_softmax(logits, axis=1)


# ---------------------------------------------------------------------------
# Parameter construction (synthetic weights, stored as (in, out)) and the
# init-time transformation into the fused / lane-padded kernel layout.
# ---------------------------------------------------------------------------
def init_params(key, nA, scaling_factor, n_hidden=64):
    ks = jax.random.split(key, 8)

    def w(k, fan_in, fan_out):
        return jax.random.normal(k, (fan_in, fan_out), jnp.float32) / jnp.sqrt(fan_in)

    def b(k, n):
        return 0.1 * jax.random.normal(k, (n,), jnp.float32)

    return {
        "w_s": w(ks[0], 6, n_hidden), "b_s": b(ks[1], n_hidden),
        "w_c": w(ks[2], 4, n_hidden), "b_c": b(ks[3], n_hidden),
        "w1": w(ks[4], n_hidden, n_hidden), "b1": b(ks[5], n_hidden),
        "w2": w(ks[6], n_hidden, nA), "b2": b(ks[7], nA),
        "scale": jnp.asarray(scaling_factor, jnp.float32).reshape(-1),
    }


def prepare_kernel_params(params, *, lane_dense_out=True):
    """All per-forward reshapes / fusions hoisted to init time."""
    H = params["w1"].shape[0]
    nA = params["w2"].shape[1]
    nS = params["w_s"].shape[0]          # 6
    nC = params["w_c"].shape[0]          # 4

    # Fold the scaling factor into the c-embedding weights.
    w_c_scaled = params["scale"][:, None] * params["w_c"]          # (4, H)

    zH = lambda r: jnp.zeros((r, H), jnp.float32)
    # Fused embedding: output lanes [0,H) = s_emb, [H,2H) = c_emb.
    w_state = jnp.concatenate([params["w_s"], zH(nS)], axis=1)             # (6, 2H)
    w_ret = jnp.concatenate([zH(nC - 1), w_c_scaled[:nC - 1]], axis=1)     # (3, 2H)
    w_hor = jnp.concatenate([zH(1), w_c_scaled[nC - 1:]], axis=1)          # (1, 2H)
    b_sc = jnp.concatenate([params["b_s"], params["b_c"]]).reshape(1, 2 * H)

    w2, b2 = params["w2"], params["b2"]
    nA_pad = _round_up(nA, 128) if lane_dense_out else nA
    if nA_pad != nA:
        w2 = jnp.concatenate([w2, jnp.zeros((H, nA_pad - nA), jnp.float32)], axis=1)
        # Padded logits get -1e30 so they never win the row max and exp() to 0:
        # the log-softmax over the real columns is unchanged.
        b2 = jnp.concatenate([b2, jnp.full((nA_pad - nA,), -1e30, jnp.float32)])

    return {
        "w_state": w_state, "w_ret": w_ret, "w_hor": w_hor, "b_sc": b_sc,
        "w1": params["w1"], "b1": params["b1"].reshape(1, H),
        "w2": w2, "b2": b2.reshape(1, nA_pad),
    }


if __name__ == "__main__":
    key = jax.random.PRNGKey(0)
    k_param, k_state, k_ret, k_hor = jax.random.split(key, 4)

    nA = 6
    batch = 2
    scaling_factor = jnp.array([0.02, 0.02, 0.02, 0.01], dtype=jnp.float32)
    params = init_params(k_param, nA, scaling_factor)
    kparams = prepare_kernel_params(params, lane_dense_out=True)

    # Shapes implied by the module: Linear(6) state, Linear(4) = cat(return(3), horizon(1))
    state = jax.random.normal(k_state, (batch, 6), jnp.float32)
    desired_return = jax.random.normal(k_ret, (batch, 3), jnp.float32) * 10.0
    desired_horizon = jax.random.uniform(k_hor, (batch, 1), jnp.float32) * 50.0

    fwd = jax.jit(functools.partial(minecart_forward, kparams, n_actions=nA))
    log_prob = jax.block_until_ready(fwd(state, desired_return, desired_horizon))

    assert log_prob.shape == (batch, nA)
    assert bool(jnp.all(jnp.isfinite(log_prob)))
    # LogSoftmax sanity: rows exponentiate to probability distributions.
    row_sums = jnp.exp(log_prob).sum(axis=1)
    assert bool(jnp.all(jnp.abs(row_sums - 1.0) < 1e-4))
    # Match the pure-JAX reference (tight tol: exact sigmoid, f32 everywhere).
    ref = minecart_forward_ref(params, state, desired_return, desired_horizon)
    assert bool(jnp.all(jnp.abs(log_prob - ref) < 1e-4))

    # Multi-tile batch with a ragged last block (exercises the grid/pipeline
    # path and the dropped out-of-bounds rows).
    B2 = 300
    k2s, k2r, k2h = jax.random.split(jax.random.PRNGKey(1), 3)
    st2 = jax.random.normal(k2s, (B2, 6), jnp.float32)
    rt2 = jax.random.normal(k2r, (B2, 3), jnp.float32) * 10.0
    hz2 = jax.random.uniform(k2h, (B2, 1), jnp.float32) * 50.0
    out2 = jax.block_until_ready(fwd(st2, rt2, hz2))
    ref2 = minecart_forward_ref(params, st2, rt2, hz2)
    assert out2.shape == (B2, nA)
    assert bool(jnp.all(jnp.abs(out2 - ref2) < 1e-4))

    print("KERNEL_OK")
</pallas_src>

<mosaic_0001>
module attributes {stable_mosaic.version = 11 : i64} {
  func.func @_minecart_kernel(%arg0: i32, %arg1: memref<8x6xf32, #tpu.memory_space<vmem>>, %arg2: memref<8x3xf32, #tpu.memory_space<vmem>>, %arg3: memref<8x1xf32, #tpu.memory_space<vmem>>, %arg4: memref<6x128xf32, #tpu.memory_space<vmem>>, %arg5: memref<3x128xf32, #tpu.memory_space<vmem>>, %arg6: memref<1x128xf32, #tpu.memory_space<vmem>>, %arg7: memref<1x128xf32, #tpu.memory_space<vmem>>, %arg8: memref<64x64xf32, #tpu.memory_space<vmem>>, %arg9: memref<1x64xf32, #tpu.memory_space<vmem>>, %arg10: memref<64x128xf32, #tpu.memory_space<vmem>>, %arg11: memref<1x128xf32, #tpu.memory_space<vmem>>, %arg12: memref<8x128xf32, #tpu.memory_space<vmem>>) attributes {dimension_semantics = [#tpu.dimension_semantics<parallel>], iteration_bounds = array<i64: 1>, scalar_prefetch = 0 : i64, scratch_operands = 0 : i64, tpu.core_type = #tpu.core_type<tc>, window_params = [{transform_indices = @transform_0, window_bounds = array<i64: 8, 6>}, {transform_indices = @transform_1, window_bounds = array<i64: 8, 3>}, {transform_indices = @transform_2, window_bounds = array<i64: 8, 1>}, {pipeline_mode = #tpu.pipeline_mode<synchronous>, transform_indices = @transform_3, window_bounds = array<i64: 6, 128>}, {pipeline_mode = #tpu.pipeline_mode<synchronous>, transform_indices = @transform_4, window_bounds = array<i64: 3, 128>}, {pipeline_mode = #tpu.pipeline_mode<synchronous>, transform_indices = @transform_5, window_bounds = array<i64: 1, 128>}, {pipeline_mode = #tpu.pipeline_mode<synchronous>, transform_indices = @transform_6, window_bounds = array<i64: 1, 128>}, {pipeline_mode = #tpu.pipeline_mode<synchronous>, transform_indices = @transform_7, window_bounds = array<i64: 64, 64>}, {pipeline_mode = #tpu.pipeline_mode<synchronous>, transform_indices = @transform_8, window_bounds = array<i64: 1, 64>}, {pipeline_mode = #tpu.pipeline_mode<synchronous>, transform_indices = @transform_9, window_bounds = array<i64: 64, 128>}, {pipeline_mode = #tpu.pipeline_mode<synchronous>, transform_indices = @transform_10, window_bounds = array<i64: 1, 128>}, {transform_indices = @transform_11, window_bounds = array<i64: 8, 128>}]} {
    %c0 = arith.constant 0 : index
    %c0_0 = arith.constant 0 : index
    %0 = vector.load %arg1[%c0, %c0_0] : memref<8x6xf32, #tpu.memory_space<vmem>>, vector<8x6xf32>
    %c0_1 = arith.constant 0 : index
    %c0_2 = arith.constant 0 : index
    %1 = vector.load %arg2[%c0_1, %c0_2] : memref<8x3xf32, #tpu.memory_space<vmem>>, vector<8x3xf32>
    %c0_3 = arith.constant 0 : index
    %c0_4 = arith.constant 0 : index
    %2 = vector.load %arg3[%c0_3, %c0_4] : memref<8x1xf32, #tpu.memory_space<vmem>>, vector<8x1xf32>
    %c0_5 = arith.constant 0 : index
    %c0_6 = arith.constant 0 : index
    %3 = vector.load %arg4[%c0_5, %c0_6] : memref<6x128xf32, #tpu.memory_space<vmem>>, vector<6x128xf32>
    %cst = arith.constant dense<0.000000e+00> : vector<8x128xf32>
    %4 = tpu.matmul %0, %3, %cst {dimension_numbers = #tpu.dot_dimension_numbers<[1], [0], [0], [1], [0, 0, 1, 1], [], []>} : vector<8x6xf32>, vector<6x128xf32>, vector<8x128xf32> -> vector<8x128xf32>
    %c0_7 = arith.constant 0 : index
    %c0_8 = arith.constant 0 : index
    %5 = vector.load %arg5[%c0_7, %c0_8] : memref<3x128xf32, #tpu.memory_space<vmem>>, vector<3x128xf32>
    %cst_9 = arith.constant dense<0.000000e+00> : vector<8x128xf32>
    %6 = tpu.matmul %1, %5, %cst_9 {dimension_numbers = #tpu.dot_dimension_numbers<[1], [0], [0], [1], [0, 0, 1, 1], [], []>} : vector<8x3xf32>, vector<3x128xf32>, vector<8x128xf32> -> vector<8x128xf32>
    %7 = arith.addf %4, %6 : vector<8x128xf32>
    %c0_10 = arith.constant 0 : index
    %c0_11 = arith.constant 0 : index
    %8 = vector.load %arg6[%c0_10, %c0_11] : memref<1x128xf32, #tpu.memory_space<vmem>>, vector<1x128xf32>
    %9 = vector.broadcast %2 : vector<8x1xf32> to vector<8x128xf32>
    %10 = vector.broadcast %8 : vector<1x128xf32> to vector<8x128xf32>
    %11 = arith.mulf %9, %10 : vector<8x128xf32>
    %12 = arith.addf %7, %11 : vector<8x128xf32>
    %c0_12 = arith.constant 0 : index
    %c0_13 = arith.constant 0 : index
    %13 = vector.load %arg7[%c0_12, %c0_13] : memref<1x128xf32, #tpu.memory_space<vmem>>, vector<1x128xf32>
    %14 = vector.broadcast %13 : vector<1x128xf32> to vector<8x128xf32>
    %15 = arith.addf %12, %14 : vector<8x128xf32>
    %cst_14 = arith.constant 0.000000e+00 : f32
    %16 = vector.broadcast %cst_14 : f32 to vector<8x128xf32>
    %17 = arith.subf %16, %15 : vector<8x128xf32>
    %18 = math.exp %17 : vector<8x128xf32>
    %cst_15 = arith.constant 1.000000e+00 : f32
    %19 = vector.broadcast %cst_15 : f32 to vector<8x128xf32>
    %20 = arith.addf %19, %18 : vector<8x128xf32>
    %cst_16 = arith.constant 1.000000e+00 : f32
    %21 = vector.broadcast %cst_16 : f32 to vector<8x128xf32>
    %22 = arith.divf %21, %20 : vector<8x128xf32>
    %23 = vector.extract_strided_slice %22 {offsets = [0, 0], sizes = [8, 64], strides = [1, 1]} : vector<8x128xf32> to vector<8x64xf32>
    %24 = vector.extract_strided_slice %22 {offsets = [0, 64], sizes = [8, 64], strides = [1, 1]} : vector<8x128xf32> to vector<8x64xf32>
    %25 = arith.mulf %23, %24 : vector<8x64xf32>
    %c0_17 = arith.constant 0 : index
    %c0_18 = arith.constant 0 : index
    %26 = vector.load %arg8[%c0_17, %c0_18] : memref<64x64xf32, #tpu.memory_space<vmem>>, vector<64x64xf32>
    %cst_19 = arith.constant dense<0.000000e+00> : vector<8x64xf32>
    %27 = tpu.matmul %25, %26, %cst_19 {dimension_numbers = #tpu.dot_dimension_numbers<[1], [0], [0], [1], [0, 0, 1, 1], [], []>} : vector<8x64xf32>, vector<64x64xf32>, vector<8x64xf32> -> vector<8x64xf32>
    %c0_20 = arith.constant 0 : index
    %c0_21 = arith.constant 0 : index
    %28 = vector.load %arg9[%c0_20, %c0_21] : memref<1x64xf32, #tpu.memory_space<vmem>>, vector<1x64xf32>
    %29 = vector.broadcast %28 : vector<1x64xf32> to vector<8x64xf32>
    %30 = arith.addf %27, %29 : vector<8x64xf32>
    %cst_22 = arith.constant 0.000000e+00 : f32
    %31 = vector.broadcast %cst_22 : f32 to vector<8x64xf32>
    %32 = arith.maximumf %30, %31 : vector<8x64xf32>
    %c0_23 = arith.constant 0 : index
    %c0_24 = arith.constant 0 : index
    %33 = vector.load %arg10[%c0_23, %c0_24] : memref<64x128xf32, #tpu.memory_space<vmem>>, vector<64x128xf32>
    %cst_25 = arith.constant dense<0.000000e+00> : vector<8x128xf32>
    %34 = tpu.matmul %32, %33, %cst_25 {dimension_numbers = #tpu.dot_dimension_numbers<[1], [0], [0], [1], [0, 0, 1, 1], [], []>} : vector<8x64xf32>, vector<64x128xf32>, vector<8x128xf32> -> vector<8x128xf32>
    %c0_26 = arith.constant 0 : index
    %c0_27 = arith.constant 0 : index
    %35 = vector.load %arg11[%c0_26, %c0_27] : memref<1x128xf32, #tpu.memory_space<vmem>>, vector<1x128xf32>
    %36 = vector.broadcast %35 : vector<1x128xf32> to vector<8x128xf32>
    %37 = arith.addf %34, %36 : vector<8x128xf32>
    %cst_28 = arith.constant dense<0xFF800000> : vector<8xf32>
    %38 = vector.multi_reduction <maximumf>, %37, %cst_28 [1] : vector<8x128xf32> to vector<8xf32>
    %39 = vector.shape_cast %38 : vector<8xf32> to vector<8x1xf32>
    %40 = vector.broadcast %39 : vector<8x1xf32> to vector<8x128xf32>
    %41 = arith.subf %37, %40 : vector<8x128xf32>
    %42 = math.exp %41 : vector<8x128xf32>
    %cst_29 = arith.constant dense<0.000000e+00> : vector<8xf32>
    %43 = vector.multi_reduction <add>, %42, %cst_29 [1] : vector<8x128xf32> to vector<8xf32>
    %44 = vector.shape_cast %43 : vector<8xf32> to vector<8x1xf32>
    %45 = math.log %44 : vector<8x1xf32>
    %46 = vector.broadcast %45 : vector<8x1xf32> to vector<8x128xf32>
    %47 = arith.subf %41, %46 : vector<8x128xf32>
    %c0_30 = arith.constant 0 : index
    %c0_31 = arith.constant 0 : index
    %48 = vector.load %arg12[%c0_30, %c0_31] : memref<8x128xf32, #tpu.memory_space<vmem>>, vector<8x128xf32>
    tpu.vector_store %arg12[%c0_30, %c0_31], %47 {strides = array<i32>} : memref<8x128xf32, #tpu.memory_space<vmem>>, vector<8x128xf32>,
    return
  }
  func.func @transform_0(%arg0: i32) -> (i32, i32) {
    %c0_i32 = arith.constant 0 : i32
    %c0_i32_0 = arith.constant 0 : i32
    return %arg0, %c0_i32 : i32, i32
  }
  func.func @transform_1(%arg0: i32) -> (i32, i32) {
    %c0_i32 = arith.constant 0 : i32
    %c0_i32_0 = arith.constant 0 : i32
    return %arg0, %c0_i32 : i32, i32
  }
  func.func @transform_2(%arg0: i32) -> (i32, i32) {
    %c0_i32 = arith.constant 0 : i32
    %c0_i32_0 = arith.constant 0 : i32
    return %arg0, %c0_i32 : i32, i32
  }
  func.func @transform_3(%arg0: i32) -> (i32, i32) {
    %c0_i32 = arith.constant 0 : i32
    %c0_i32_0 = arith.constant 0 : i32
    %c0_i32_1 = arith.constant 0 : i32
    return %c0_i32, %c0_i32_0 : i32, i32
  }
  func.func @transform_4(%arg0: i32) -> (i32, i32) {
    %c0_i32 = arith.constant 0 : i32
    %c0_i32_0 = arith.constant 0 : i32
    %c0_i32_1 = arith.constant 0 : i32
    return %c0_i32, %c0_i32_0 : i32, i32
  }
  func.func @transform_5(%arg0: i32) -> (i32, i32) {
    %c0_i32 = arith.constant 0 : i32
    %c0_i32_0 = arith.constant 0 : i32
    %c0_i32_1 = arith.constant 0 : i32
    return %c0_i32, %c0_i32_0 : i32, i32
  }
  func.func @transform_6(%arg0: i32) -> (i32, i32) {
    %c0_i32 = arith.constant 0 : i32
    %c0_i32_0 = arith.constant 0 : i32
    %c0_i32_1 = arith.constant 0 : i32
    return %c0_i32, %c0_i32_0 : i32, i32
  }
  func.func @transform_7(%arg0: i32) -> (i32, i32) {
    %c0_i32 = arith.constant 0 : i32
    %c0_i32_0 = arith.constant 0 : i32
    %c0_i32_1 = arith.constant 0 : i32
    return %c0_i32, %c0_i32_0 : i32, i32
  }
  func.func @transform_8(%arg0: i32) -> (i32, i32) {
    %c0_i32 = arith.constant 0 : i32
    %c0_i32_0 = arith.constant 0 : i32
    %c0_i32_1 = arith.constant 0 : i32
    return %c0_i32, %c0_i32_0 : i32, i32
  }
  func.func @transform_9(%arg0: i32) -> (i32, i32) {
    %c0_i32 = arith.constant 0 : i32
    %c0_i32_0 = arith.constant 0 : i32
    %c0_i32_1 = arith.constant 0 : i32
    return %c0_i32, %c0_i32_0 : i32, i32
  }
  func.func @transform_10(%arg0: i32) -> (i32, i32) {
    %c0_i32 = arith.constant 0 : i32
    %c0_i32_0 = arith.constant 0 : i32
    %c0_i32_1 = arith.constant 0 : i32
    return %c0_i32, %c0_i32_0 : i32, i32
  }
  func.func @transform_11(%arg0: i32) -> (i32, i32) {
    %c0_i32 = arith.constant 0 : i32
    %c0_i32_0 = arith.constant 0 : i32
    return %arg0, %c0_i32 : i32, i32
  }
}

</mosaic_0001>

<bundles_post_ra>
// kernel: minecart_forward.1
= control target key start
LH: loop header
LB: loop body
LE: loop exit
PB: predicated region body
PF: predicated region fallthrough
CT: control target
= control target key end

     0   :  { %16 = vsyncpa [#allocation3], 0  ;;  %s862_s0 = inlined_call_operand.vmem [shape: f32[2,6], index: 0, kind: input, shape index: {}]   ;;  %s863_s1 = inlined_call_operand.hbm [shape: f32[2,3], index: 1, kind: input, shape index: {}]   ;;  %s864_s2 = inlined_call_operand.vmem [shape: f32[2,1], index: 2, kind: input, shape index: {}]   ;;  %s865_s3 = inlined_call_operand.vmem [shape: f32[6,128], index: 3, kind: input, shape index: {}]   ;;  %s866_s4 = inlined_call_operand.vmem [shape: f32[3,128], index: 4, kind: input, shape index: {}]   ;;  %s867_s5 = inlined_call_operand.vmem [shape: f32[1,128], index: 5, kind: input, shape index: {}]   ;;  %s868_s6 = inlined_call_operand.vmem [shape: f32[1,128], index: 6, kind: input, shape index: {}]   ;;  %s869_s7 = inlined_call_operand.hbm [shape: f32[64,64], index: 7, kind: input, shape index: {}]   ;;  %s870_s8 = inlined_call_operand.vmem [shape: f32[1,64], index: 8, kind: input, shape index: {}]   ;;  %s871_s9 = inlined_call_operand.hbm [shape: f32[64,128], index: 9, kind: input, shape index: {}]   ;;  %s872_s10 = inlined_call_operand.vmem [shape: f32[1,128], index: 10, kind: input, shape index: {}]   ;;  %s873_s11 = inlined_call_operand.hbm [shape: f32[2,128], index: 11, kind: output, shape index: {}]  }
   0x1   :  { %17 = vsyncpa [#allocation6], 0 }
   0x2   :  { %18 = vsyncpa [#allocation4], 0 }
   0x3   :  { %25 = vsyncadd [#allocation3], 96  ;;  %s701_s17 = smov [#allocation5]   ;;  %s607_s21 = scalar_lea.hbm %s869_s7, 1024 }
   0x4   :  { %s48_s18 = sshll.u32 %s701_s17, 4  ;;  %p608_p0 = scmp.ne.s32.totalorder %s869_s7, %s607_s21  ;;  %s49_s18 = int_to_ptr.vmem [resolvable:$true] %s48_s18 }
   0x5   :  { %p611_p1 = scmp.lt.u32.totalorder %s607_s21, %s869_s7 }
   0x7   :  { %p613_p2 = pnand %p611_p1, %p608_p0 }
   0x9   :  { %616 = shalt.err (!%p613_p2)
}
   0xa   :  { %s617_s26 = scalar_lea.vmem %s49_s18, 1024  ;;  %p622_p4 = scmp.lt.s32.totalorder %s49_s18, %s49_s18 }
   0xb   :  { %p618_p3 = scmp.ne.s32.totalorder %s49_s18, %s617_s26  ;;  %p623_p5 = scmp.lt.s32.totalorder %s617_s26, %s617_s26 }
   0xd   :  { %p624_p6 = por %p623_p5, %p622_p4 }
   0xf   :  { %p625_p7 = pnand %p624_p6, %p618_p3 }
  0x11   :  { %628 = shalt.err (!%p625_p7)
}
  0x12   :  { %s702_s27 = smov 128   ;;  %s703_s28 = smov 8  }
  0x13   :  { %54 = dma.hbm_to_vmem [thread:$0]  %s869_s7, 1024, %s49_s18, [#allocation6], %s702_s27, %s702_s27, %s703_s28  }
  0x14   :  { %s704_s12 = smov [#allocation2]   ;;  %s629_s16 = scalar_lea.hbm %s863_s1, 32 }
  0x15   :  { %s26_s13 = sshll.u32 %s704_s12, 4  ;;  %p630_p8 = scmp.ne.s32.totalorder %s863_s1, %s629_s16  ;;  %s27_s13 = int_to_ptr.vmem [resolvable:$true] %s26_s13 }
  0x16   :  { %p633_p9 = scmp.lt.u32.totalorder %s629_s16, %s863_s1 }
  0x18   :  { %p635_p10 = pnand %p633_p9, %p630_p8 }
  0x1a   :  { %638 = shalt.err (!%p635_p10)
}
  0x1b   :  { %s639_s22 = scalar_lea.vmem %s27_s13, 32  ;;  %s643_s7 = scalar_lea.vmem %s27_s13, 128 }
  0x1c   :  { %p640_p11 = scmp.ne.s32.totalorder %s27_s13, %s639_s22  ;;  %p644_p12 = scmp.lt.s32.totalorder %s27_s13, %s27_s13 }
  0x1d   :  { %p645_p13 = scmp.lt.s32.totalorder %s643_s7, %s639_s22 }
  0x1f   :  { %p646_p0 = por %p645_p13, %p644_p12 }
  0x21   :  { %p647_p1 = pnand %p646_p0, %p640_p11 }
  0x23   :  { %650 = shalt.err (!%p647_p1)
}
  0x24   :  { %s705_s18 = smov 32   ;;  %s706_s23 = smov 2  }
  0x25   :  { %32 = dma.hbm_to_vmem [thread:$0]  %s863_s1, 32, %s27_s13, [#allocation3], %s705_s18, %s705_s18, %s706_s23  }
  0x26   :  { %s707_s26 = smov [#allocation7]   ;;  %s651_s14 = scalar_lea.hbm %s871_s9, 1024 }
  0x27   :  { %s62_s29 = sshll.u32 %s707_s26, 4  ;;  %p652_p2 = scmp.ne.s32.totalorder %s871_s9, %s651_s14  ;;  %s63_s29 = int_to_ptr.vmem [resolvable:$true] %s62_s29 }
  0x28   :  { %p655_p3 = scmp.lt.u32.totalorder %s651_s14, %s871_s9 }
  0x2a   :  { %p657_p4 = pnand %p655_p3, %p652_p2 }
  0x2c   :  { %660 = shalt.err (!%p657_p4)
}
  0x2d   :  { %s661_s20 = scalar_lea.vmem %s63_s29, 1024  ;;  %p666_p6 = scmp.lt.s32.totalorder %s63_s29, %s63_s29 }
  0x2e   :  { %p662_p5 = scmp.ne.s32.totalorder %s63_s29, %s661_s20  ;;  %p667_p7 = scmp.lt.s32.totalorder %s661_s20, %s661_s20 }
  0x30   :  { %p668_p8 = por %p667_p7, %p666_p6 }
  0x32   :  { %p669_p9 = pnand %p668_p8, %p662_p5 }
  0x34   :  { %672 = shalt.err (!%p669_p9)
}
  0x35   :  { %68 = dma.hbm_to_vmem [thread:$0]  %s871_s9, 1024, %s63_s29, [#allocation6], %s702_s27, %s702_s27, %s703_s28  }
  0x36   :  { %695 = dma.done.wait [#allocation3], 128  }
  0x37   :  { %696 = vsyncadd [#allocation3], 4294967168 }
  0x38   :  { %697 = dma.done.wait [#allocation6], 2048  }
  0x39   :  { %698 = vsyncadd [#allocation6], 4294965248  ;;  %v708_v0 = vmov 0.0   ;;  %vm709_vm0 = vmmov 0   ;;  %v710_v1 = vmov 0   ;;  %vm89_vm1 = vcmask 1042432  }
  0x3a   :  { %513 = vmatprep.subr.mxu0 %v708_v0  ;;  %518 = vmatprep.subr.mxu1 %v708_v0  ;;  %vm167_vm2 = vcmask 1045504   ;;  %vm85_vm3 = vcmask 23552   ;;  %vm163_vm4 = vcmask 48128   ;;  %v84_v2 = vld [vmem:[%s866_s4] sm:$0x7]  ;;  %v274_v7 = vld [vmem:[#allocation5] sm:$0xff] }
  0x3b   :  { %515 = vmatprep.mubr.msk.f32.mxu0 %vm709_vm0, %v708_v0  ;;  %520 = vmatprep.mubr.msk.f32.mxu1 %vm709_vm0, %v708_v0  ;;  %v83_v3 = vld [vmem:[%s865_s3] sm:$0x3f]  ;;  %v275_v8 = vld [vmem:[#allocation5 + $0x8] sm:$0xff]  ;;  %v276_v9 = vld [vmem:[#allocation5 + $0x10] sm:$0xff]  ;;  %v711_v10 = vmov 0.0|0.0   ;;  %vm289_vm5 = vcmask 523264  }
  0x3c   :  { %598 = vset.pattern.permute.xlu0 %v710_v1  ;;  %v81_v4 = vld [vmem:[#allocation2] sm:$0xff]  ;;  %514 = vmatpush3.msk.msra.mxu0 %vm89_vm1, %v84_v2  ;;  %v562_v11 = vpack.c.bf16 %v275_v8, %v274_v7  ;;  %v278_v14 = vld [vmem:[#allocation5 + $0x20] sm:$0xff]  ;;  %v279_v15 = vld [vmem:[#allocation5 + $0x28] sm:$0xff] }
  0x3d   :  { %519 = vmatpush3.msk.msra.mxu1 %vm167_vm2, %v83_v3  ;;  %v80_v5 = vld [vmem:[%s862_s0] sm:$0xff]  ;;  %516 = vmatmul.mubr.msk.f32.vlgmr.msra.gmra.mrb[0].mxu0 %vm85_vm3, %v81_v4  ;;  %v568_v16 = vpack.c.bf16 %v279_v15, %v278_v14  ;;  %v280_v17 = vld [vmem:[#allocation5 + $0x30] sm:$0xff]  ;;  %v364_v35 = vld [vmem:[#allocation7] sm:$0xff] }
  0x3e   :  { %v82_v6 = vld [vmem:[%s864_s2] sm:$0xff]  ;;  %521 = vmatmul.mubr.msk.f32.vlgmr.msra.gmra.mrb[0].mxu1 %vm163_vm4, %v80_v5  ;;  %539 = vmatprep.mubr.msk.f32.mxu0 %vm709_vm0, %v708_v0  ;;  %v365_v36 = vld [vmem:[#allocation7 + $0x8] sm:$0xff]  ;;  %v366_v37 = vld [vmem:[#allocation7 + $0x10] sm:$0xff] }
  0x3f   :  { %244 = vperm.xlu0 %598, %v82_v6   ;;  %558 = vmatprep.mubr.msk.f32.mxu1 %vm709_vm0, %v708_v0  ;;  %v277_v12 = vld [vmem:[#allocation5 + $0x18] sm:$0xff]  ;;  %v574_v38 = vpack.c.bf16 %v365_v36, %v364_v35  ;;  %v368_v41 = vld [vmem:[#allocation7 + $0x20] sm:$0xff]  ;;  %v369_v42 = vld [vmem:[#allocation7 + $0x28] sm:$0xff] }
  0x40   :  { %561 = vmatprep.subr.bf16.mxu0 %v711_v10  ;;  %573 = vmatprep.subr.bf16.mxu1 %v711_v10  ;;  %v565_v13 = vpack.c.bf16 %v277_v12, %v276_v9  ;;  %v281_v18 = vld [vmem:[#allocation5 + $0x38] sm:$0xff]  ;;  %v580_v43 = vpack.c.bf16 %v369_v42, %v368_v41  ;;  %v370_v47 = vld [vmem:[#allocation7 + $0x30] sm:$0xff] }
  0x41   :  { %563 = vmatpush3.bf16.msra.mxu0 %v562_v11  ;;  %v571_v19 = vpack.c.bf16 %v281_v18, %v280_v17  ;;  %v485_v20 = vld [vmem:[%s867_s5] ss:$0 sm:$0xff]  ;;  %575 = vmatpush3.bf16.msra.mxu1 %v574_v38  ;;  %s712_s5 = smov 64  }
  0x42   :  { %564 = vmatprep.subr.bf16.mxu0 %v711_v10  ;;  %v486_v28 = vld [vmem:[%s868_s6] ss:$0 sm:$0xff]  ;;  %576 = vmatprep.subr.bf16.mxu1 %v711_v10 }
  0x43   :  { %v367_v39 = vld [vmem:[#allocation7 + $0x18] sm:$0xff] }
  0x44   :  { %v577_v40 = vpack.c.bf16 %v367_v39, %v366_v37  ;;  %v371_v48 = vld [vmem:[#allocation7 + $0x38] sm:$0xff] }
  0x45   :  { %566 = vmatpush3.bf16.msra.mxu0 %v565_v13  ;;  %v583_v49 = vpack.c.bf16 %v371_v48, %v370_v47  ;;  %v487_v50 = vld [vmem:[%s870_s8] ss:$0 sm:$0xff] }
  0x46   :  { %567 = vmatprep.subr.bf16.mxu0 %v711_v10  ;;  %578 = vmatpush3.bf16.msra.mxu1 %v577_v40  ;;  %v489_v55 = vld [vmem:[%s872_s10] ss:$0 sm:$0xff] }
  0x47   :  { %579 = vmatprep.subr.bf16.mxu1 %v711_v10 }
  0x49   :  { %569 = vmatpush3.bf16.msra.mxu0 %v568_v16 }
  0x4a   :  { %570 = vmatprep.subr.bf16.mxu0 %v711_v10  ;;  %581 = vmatpush3.bf16.msra.mxu1 %v580_v43 }
  0x4b   :  { %582 = vmatprep.subr.bf16.mxu1 %v711_v10 }
  0x4d   :  { %572 = vmatpush3.bf16.msra.mxu0 %v571_v19 }
  0x4e   :  { %584 = vmatpush3.bf16.msra.mxu1 %v583_v49 }
  0xbe   :  { %v245_v21 = vpop.permute.xlu0 %244 }
  0xbf   :  { %v253_v22 = vmul.f32 %v485_v20, %v245_v21 }
 0x110   :  { %v159_v23 = vpop.f32.mrb[0].mxu0 }
 0x111   :  { %v237_v24 = vpop.f32.mrb[0].mxu1  ;;  %v517_v26 = vpop.f32.mrb[1].mxu0 }
 0x112   :  { %v238_v25 = vadd.f32 %v237_v24, %v159_v23  ;;  %v522_v27 = vpop.f32.mrb[1].mxu1 }
 0x114   :  { %v254_v29 = vadd.f32 %v253_v22, %v238_v25 }
 0x116   :  { %v262_v30 = vadd.f32 %v486_v28, %v254_v29 }
 0x118   :  { %v263_v31 = vsub.f32 0.0, %v262_v30 }
 0x11a   :  { %v264_v32 = vmul.f32 1.442695, %v263_v31 }
 0x11c   :  { %599 = vpow2.f32 %v264_v32 }
 0x126   :  { %v600_v33 = vpop.eup %599 }
 0x127   :  { %v266_v34 = vadd.f32 1.0, %v600_v33 }
 0x129   :  { %601 = vrcp.f32 %v266_v34 }
 0x133   :  { %v602_v44 = vpop.eup %601 }
 0x134   :  { %270 = vrot.lane.b32.xlu0 %v602_v44, %s712_s5 }
 0x1a6   :  { %v271_v45 = vpop.permute.xlu0 %270 }
 0x1a7   :  { %v273_v46 = vmul.f32 %v602_v44, %v271_v45 }
 0x1a9   :  { %540 = vmatmul.mubr.msk.f32.vlgmr.msra.gmra.mrb[2].mxu0 %vm289_vm5, %v273_v46 }
 0x27c   :  { %v359_v51 = vpop.f32.mrb[2].mxu0 }
 0x27d   :  { %v360_v52 = vadd.f32 %v487_v50, %v359_v51  ;;  %v541_v53 = vpop.f32.mrb[3].mxu0 }
 0x27f   :  { %v363_v54 = vmax.f32 %v360_v52, 0.0 }
 0x281   :  { %559 = vmatmul.mubr.msk.f32.vlgmr.msra.gmra.mrb[2].mxu1 %vm289_vm5, %v363_v54 }
 0x354   :  { %v448_v56 = vpop.f32.mrb[2].mxu1 }
 0x355   :  { %v449_v57 = vadd.f32 %v489_v55, %v448_v56  ;;  %v560_v58 = vpop.f32.mrb[3].mxu1 }
 0x357   :  { %452 = vmax.xlane.f32.xlu1 %v449_v57 }
 0x3e4   :  { %v453_v59 = vpop.xlane.xlu1 %452 }
 0x3e5   :  { %v454_v60 = vsub.f32 %v449_v57, %v453_v59 }
 0x3e7   :  { %v455_v61 = vmul.f32 1.442695, %v454_v60 }
 0x3e9   :  { %603 = vpow2.f32 %v455_v61 }
 0x3f3   :  { %v604_v62 = vpop.eup %603 }
 0x3f4   :  { %457 = vadd.xlane.f32.xlu1 %v604_v62 }
 0x481   :  { %v458_v63 = vpop.xlane.xlu1 %457 }
 0x482   :  { %605 = vlog2.f32 %v458_v63 }
 0x48c   :  { %v606_v0 = vpop.eup %605 }
 0x48d   :  { %v460_v1 = vmul.f32 0.6931472, %v606_v0 }
 0x48f   :  { %v461_v2 = vsub.f32 %v454_v60, %v460_v1 }
 0x491   :  { %462 = vst [vmem:[#allocation8] sm:$0xff] %v461_v2 }
 0x492   :  { %467 = vsyncadd [#allocation4], 96  ;;  %s713_s8 = smov [#allocation8]  }
 0x493   :  { %s468_s12 = sshll.u32 %s713_s8, 4  ;;  %s469_s12 = int_to_ptr.vmem [resolvable:$true] %s468_s12 }
 0x494   :  { %s673_s10 = scalar_lea.vmem %s469_s12, 32  ;;  %s677_s14 = scalar_lea.vmem %s469_s12, 128 }
 0x495   :  { %p674_p10 = scmp.ne.s32.totalorder %s469_s12, %s673_s10  ;;  %p678_p11 = scmp.lt.s32.totalorder %s469_s12, %s469_s12 }
 0x496   :  { %p679_p12 = scmp.lt.s32.totalorder %s677_s14, %s673_s10 }
 0x498   :  { %p680_p13 = por %p679_p12, %p678_p11 }
 0x49a   :  { %p681_p0 = pnand %p680_p13, %p674_p10 }
 0x49c   :  { %684 = shalt.err (!%p681_p0)
}
 0x49d   :  { %s685_s17 = scalar_lea.hbm %s873_s11, 32 }
 0x49e   :  { %p686_p1 = scmp.ne.s32.totalorder %s873_s11, %s685_s17  ;;  %p689_p2 = scmp.lt.u32.totalorder %s685_s17, %s873_s11 }
 0x4a0   :  { %p691_p3 = pnand %p689_p2, %p686_p1 }
 0x4a2   :  { %694 = shalt.err (!%p691_p3)
}
 0x4a3   :  { %474 = dma.vmem_to_hbm [thread:$0]  %s469_s12, 32, %s873_s11, [#allocation4], %s705_s18, %s705_s18, %s706_s23  }
 0x4a4   :  { %699 = dma.done.wait [#allocation4], 128  }
 0x4a5   :  { %700 = vsyncadd [#allocation4], 4294967168 }
 0x4a6   :  { %478 = vsyncpa [#allocation3], 1 }
 0x4a7   :  { %479 = vsyncpa [#allocation6], 1 }
 0x4a8   :  { %480 = vsyncpa [#allocation4], 1 }

</bundles_post_ra>
